<compile_context>
chip_gen: v5e
topology: v5e:2x2
jax: 0.10.0
libtpu: 0.0.40
codegen_flags: <defaults>
</compile_context>

<pallas_src>
import numpy as np
import jax
import jax.numpy as jnp
from jax.experimental import pallas as pl

N_AGE = 21
A_RATE = np.float32(1.0 / 7.0)     # self.a
GAMMA = np.float32(1.0 / 7.0)      # self.gamma


def constant_settings(n_age: int = N_AGE) -> np.ndarray:
    """Deterministic contact matrix A (matches SEIR.constant_settings)."""
    A = np.ones((n_age, n_age)) * 2.0 / 3.0
    for i in range(n_age):
        A[i, i] = 1.0
        for j in range(i):
            if abs(i - j) == 1:
                A[i, j] = 11.0 / 12.0
                A[j, i] = 11.0 / 12.0
            if abs(i - j) == 2:
                A[j, i] = 5.0 / 6.0
                A[i, j] = 5.0 / 6.0
            if abs(i - j) == 3:
                A[j, i] = 3.0 / 4.0
                A[i, j] = 3.0 / 4.0
    return A.astype(np.float32)


def _contact_matrix_in_kernel() -> jnp.ndarray:
    """Rebuild A inside the kernel from |i-j|.

    A is symmetric by construction (depends only on |i-j|), so A == A^T and
    `I @ A` equals the reference `I @ A^T` exactly.  A few iota/where VPU ops;
    avoids an extra input DMA + VMEM double buffer.
    """
    i = jax.lax.broadcasted_iota(jnp.int32, (N_AGE, N_AGE), 0)
    j = jax.lax.broadcasted_iota(jnp.int32, (N_AGE, N_AGE), 1)
    d = jnp.abs(i - j)
    a = jnp.where(
        d == 0, 1.0,
        jnp.where(d == 1, 11.0 / 12.0,
                  jnp.where(d == 2, 5.0 / 6.0,
                            jnp.where(d == 3, 3.0 / 4.0, 2.0 / 3.0))))
    return a.astype(jnp.float32)


def seir_kernel(z_ref, params_ref, zt_ref):
    """z_ref      : (B, 4*N_AGE) VMEM = [S | E | I | R] along lanes
    params_ref : (B, 2)       VMEM = [beta, N]   (N unused, matches reference)
    zt_ref     : (B, 4*N_AGE) VMEM = [dS | dE | dI | dR]
    """
    S = z_ref[:, pl.ds(0 * N_AGE, N_AGE)]
    E = z_ref[:, pl.ds(1 * N_AGE, N_AGE)]
    I = z_ref[:, pl.ds(2 * N_AGE, N_AGE)]
    # z_ref[:, 3*N_AGE:] (R) is intentionally unread: dR = gamma * I only.
    beta = params_ref[:, pl.ds(0, 1)]            # (B, 1), lane-broadcasts below

    a_mat = _contact_matrix_in_kernel()          # (N, N), symmetric => A == A^T

    # lambd[b, i] = sum_j A[i, j] * I[b, j]  ==  I @ A^T  ==  I @ A  (symmetry)
    lambd = jnp.dot(I, a_mat, preferred_element_type=jnp.float32)
    lam = beta * lambd * S                       # force of infection (no /N, per reference)

    aE = A_RATE * E
    gI = GAMMA * I

    # Four direct slab stores — no stacked temporary / relayout.
    zt_ref[:, pl.ds(0 * N_AGE, N_AGE)] = -lam
    zt_ref[:, pl.ds(1 * N_AGE, N_AGE)] = lam - aE
    zt_ref[:, pl.ds(2 * N_AGE, N_AGE)] = aE - gI
    zt_ref[:, pl.ds(3 * N_AGE, N_AGE)] = gI


def seir_forward(t, z, params):
    """JAX/Pallas equivalent of SEIR.forward(t, (z, params)) -> (z_t, dparams)."""
    del t  # the ODE rhs is autonomous (t unused), kept for API parity
    z = jnp.asarray(z, jnp.float32)
    params = jnp.asarray(params, jnp.float32)
    B = z.shape[0]

    # No grid: whole arrays as single VMEM blocks (default BlockSpecs).  The
    # last-two block dims equal the array dims, so the (8,128) rule is met.
    zt = pl.pallas_call(
        seir_kernel,
        out_shape=jax.ShapeDtypeStruct((B, 4 * N_AGE), jnp.float32),
    )(z, params)

    # d(params)/dt is identically zero in the reference module; emit it in the
    # wrapper instead of paying for a padded kernel output + DMA.
    dparams = jnp.zeros((B, 2), jnp.float32)
    return zt, dparams


if __name__ == "__main__":
    key = jax.random.PRNGKey(0)
    B = 8  # batch of ODE trajectories, aligned to the 8-sublane f32 layout

    k1, k2 = jax.random.split(key)
    # state z = [S | E | I | R], each of width n_age = 21
    z = jax.random.uniform(k1, (B, 4 * N_AGE), dtype=jnp.float32)
    beta = jax.random.uniform(k2, (B, 1), dtype=jnp.float32) * 0.5
    Npop = jnp.full((B, 1), 1000.0, dtype=jnp.float32)
    params = jnp.concatenate([beta, Npop], axis=1)  # (B, 2) = [beta, N]

    t = jnp.float32(0.0)
    fwd = jax.jit(seir_forward)
    zt, dparams = fwd(t, z, params)
    jax.block_until_ready((zt, dparams))

    # Pure-JAX reference for correctness check (mirrors the PyTorch forward).
    A = jnp.asarray(constant_settings())
    S = z[:, 0 * N_AGE:1 * N_AGE]
    E = z[:, 1 * N_AGE:2 * N_AGE]
    I = z[:, 2 * N_AGE:3 * N_AGE]
    lam = beta * (I @ A.T) * S
    zt_ref = jnp.concatenate(
        [-lam, lam - A_RATE * E, A_RATE * E - GAMMA * I, GAMMA * I], axis=1)
    dparams_ref = jnp.zeros((B, 2), jnp.float32)

    assert zt.shape == (B, 4 * N_AGE) and zt.dtype == jnp.float32
    assert dparams.shape == (B, 2) and dparams.dtype == jnp.float32
    assert jnp.allclose(zt, zt_ref, atol=1e-5, rtol=1e-5)
    assert jnp.allclose(dparams, dparams_ref)

    print("KERNEL_OK")
</pallas_src>

<mosaic_0001>
module attributes {stable_mosaic.version = 11 : i64} {
  func.func @seir_kernel(%arg0: memref<8x84xf32, #tpu.memory_space<vmem>>, %arg1: memref<8x2xf32, #tpu.memory_space<vmem>>, %arg2: memref<8x84xf32, #tpu.memory_space<vmem>>) attributes {dimension_semantics = [], scalar_prefetch = 0 : i64, scratch_operands = 0 : i64, tpu.core_type = #tpu.core_type<tc>} {
    %c0 = arith.constant 0 : index
    %c0_0 = arith.constant 0 : index
    %0 = vector.load %arg0[%c0, %c0_0] : memref<8x84xf32, #tpu.memory_space<vmem>>, vector<8x21xf32>
    %c0_1 = arith.constant 0 : index
    %c21 = arith.constant 21 : index
    %1 = vector.load %arg0[%c0_1, %c21] : memref<8x84xf32, #tpu.memory_space<vmem>>, vector<8x21xf32>
    %c0_2 = arith.constant 0 : index
    %c42 = arith.constant 42 : index
    %2 = vector.load %arg0[%c0_2, %c42] : memref<8x84xf32, #tpu.memory_space<vmem>>, vector<8x21xf32>
    %c0_3 = arith.constant 0 : index
    %c0_4 = arith.constant 0 : index
    %3 = vector.load %arg1[%c0_3, %c0_4] : memref<8x2xf32, #tpu.memory_space<vmem>>, vector<8x1xf32>
    %4 = tpu.iota {dimensions = array<i32: 0>} : vector<21x21xi32>
    %5 = tpu.iota {dimensions = array<i32: 1>} : vector<21x21xi32>
    %6 = arith.subi %4, %5 : vector<21x21xi32>
    %7 = math.absi %6 : vector<21x21xi32>
    %c0_i32 = arith.constant 0 : i32
    %8 = vector.broadcast %c0_i32 : i32 to vector<21x21xi32>
    %9 = arith.cmpi eq, %7, %8 : vector<21x21xi32>
    %c1_i32 = arith.constant 1 : i32
    %10 = vector.broadcast %c1_i32 : i32 to vector<21x21xi32>
    %11 = arith.cmpi eq, %7, %10 : vector<21x21xi32>
    %c2_i32 = arith.constant 2 : i32
    %12 = vector.broadcast %c2_i32 : i32 to vector<21x21xi32>
    %13 = arith.cmpi eq, %7, %12 : vector<21x21xi32>
    %c3_i32 = arith.constant 3 : i32
    %14 = vector.broadcast %c3_i32 : i32 to vector<21x21xi32>
    %15 = arith.cmpi eq, %7, %14 : vector<21x21xi32>
    %cst = arith.constant 7.500000e-01 : f32
    %cst_5 = arith.constant 0.666666686 : f32
    %16 = vector.broadcast %cst : f32 to vector<21x21xf32>
    %17 = vector.broadcast %cst_5 : f32 to vector<21x21xf32>
    %18 = arith.select %15, %16, %17 : vector<21x21xi1>, vector<21x21xf32>
    %cst_6 = arith.constant 0.833333313 : f32
    %19 = vector.broadcast %cst_6 : f32 to vector<21x21xf32>
    %20 = arith.select %13, %19, %18 : vector<21x21xi1>, vector<21x21xf32>
    %cst_7 = arith.constant 0.916666686 : f32
    %21 = vector.broadcast %cst_7 : f32 to vector<21x21xf32>
    %22 = arith.select %11, %21, %20 : vector<21x21xi1>, vector<21x21xf32>
    %cst_8 = arith.constant 1.000000e+00 : f32
    %23 = vector.broadcast %cst_8 : f32 to vector<21x21xf32>
    %24 = arith.select %9, %23, %22 : vector<21x21xi1>, vector<21x21xf32>
    %cst_9 = arith.constant dense<0.000000e+00> : vector<8x21xf32>
    %25 = tpu.matmul %2, %24, %cst_9 {dimension_numbers = #tpu.dot_dimension_numbers<[1], [0], [0], [1], [0, 0, 1, 1], [], []>} : vector<8x21xf32>, vector<21x21xf32>, vector<8x21xf32> -> vector<8x21xf32>
    %26 = vector.broadcast %3 : vector<8x1xf32> to vector<8x21xf32>
    %27 = arith.mulf %26, %25 : vector<8x21xf32>
    %28 = arith.mulf %27, %0 : vector<8x21xf32>
    %cst_10 = arith.constant 0.142857149 : f32
    %29 = vector.broadcast %cst_10 : f32 to vector<8x21xf32>
    %30 = arith.mulf %29, %1 : vector<8x21xf32>
    %cst_11 = arith.constant 0.142857149 : f32
    %31 = vector.broadcast %cst_11 : f32 to vector<8x21xf32>
    %32 = arith.mulf %31, %2 : vector<8x21xf32>
    %cst_12 = arith.constant 0.000000e+00 : f32
    %33 = vector.broadcast %cst_12 : f32 to vector<8x21xf32>
    %34 = arith.subf %33, %28 : vector<8x21xf32>
    %c0_13 = arith.constant 0 : index
    %c0_14 = arith.constant 0 : index
    %35 = vector.load %arg2[%c0_13, %c0_14] : memref<8x84xf32, #tpu.memory_space<vmem>>, vector<8x21xf32>
    tpu.vector_store %arg2[%c0_13, %c0_14], %34 {strides = array<i32>} : memref<8x84xf32, #tpu.memory_space<vmem>>, vector<8x21xf32>,
    %36 = arith.subf %28, %30 : vector<8x21xf32>
    %c0_15 = arith.constant 0 : index
    %c21_16 = arith.constant 21 : index
    %37 = vector.load %arg2[%c0_15, %c21_16] : memref<8x84xf32, #tpu.memory_space<vmem>>, vector<8x21xf32>
    tpu.vector_store %arg2[%c0_15, %c21_16], %36 {strides = array<i32>} : memref<8x84xf32, #tpu.memory_space<vmem>>, vector<8x21xf32>,
    %38 = arith.subf %30, %32 : vector<8x21xf32>
    %c0_17 = arith.constant 0 : index
    %c42_18 = arith.constant 42 : index
    %39 = vector.load %arg2[%c0_17, %c42_18] : memref<8x84xf32, #tpu.memory_space<vmem>>, vector<8x21xf32>
    tpu.vector_store %arg2[%c0_17, %c42_18], %38 {strides = array<i32>} : memref<8x84xf32, #tpu.memory_space<vmem>>, vector<8x21xf32>,
    %c0_19 = arith.constant 0 : index
    %c63 = arith.constant 63 : index
    %40 = vector.load %arg2[%c0_19, %c63] : memref<8x84xf32, #tpu.memory_space<vmem>>, vector<8x21xf32>
    tpu.vector_store %arg2[%c0_19, %c63], %32 {strides = array<i32>} : memref<8x84xf32, #tpu.memory_space<vmem>>, vector<8x21xf32>,
    return
  }
}

</mosaic_0001>

<bundles_post_ra>
// kernel: seir_forward.1
= control target key start
LH: loop header
LB: loop body
LE: loop exit
PB: predicated region body
PF: predicated region fallthrough
CT: control target
= control target key end

     0   :  { %v14_v1 = vlaneseq  ;;  %s170_s11 = smov 86   ;;  %s208_s0 = inlined_call_operand.vmem [shape: f32[8,84], index: 0, kind: input, shape index: {}]   ;;  %s209_s1 = inlined_call_operand.vmem [shape: f32[8,2], index: 1, kind: input, shape index: {}]   ;;  %s210_s2 = inlined_call_operand.hbm [shape: f32[8,84], index: 2, kind: output, shape index: {}]  }
   0x1   :  { %v194_v0 = vld [vmem:[%s208_s0] sm:$0xff] }
   0x2   :  { %57 = vrot.lane.b32.xlu0 %v194_v0, %s170_s11 }
   0x3   :  { %7 = vsyncpa [#allocation3], 0  ;;  %v15_v2 = vshrl.u32 %v14_v1, 7  ;;  %v19_v3 = vand.u32 127, %v14_v1  ;;  %vm62_vm3 = vcmask 1044480   ;;  %v13_v28 = vld [vmem:[%s209_s1] sm:$0xff] }
   0x4   :  { %v171_v15 = vmov 0.6666667   ;;  %v93_v29 = vmul.f32 0.14285715, %v194_v0  ;;  %v172_v30 = vmov 0   ;;  %s173_s13 = smov 107  }
   0x5   :  { %v17_v4 = vadd.s32 16, %v15_v2  ;;  %v16_v5 = vadd.s32 8, %v15_v2  ;;  %v20_v6 = vsub.s32 %v15_v2, %v19_v3  ;;  %143 = vset.pattern.permute.xlu0 %v172_v30  ;;  %s174_s14 = smov 21   ;;  %s175_s1 = smov [#allocation2]  }
   0x6   :  { %97 = vrot.lane.b32.xlu1 %v93_v29, %s173_s13  ;;  %s124_s15 = sshll.u32 %s175_s1, 4  ;;  %s126_s18 = sshll.u32 %s210_s2, 4  ;;  %s125_s15 = int_to_ptr.vmem [resolvable:$true] %s124_s15  ;;  %s127_s18 = int_to_ptr.hbm [resolvable:$true] %s126_s18 }
   0x7   :  { %v22_v7 = vsub.s32 %v17_v4, %v19_v3  ;;  %v21_v8 = vsub.s32 %v16_v5, %v19_v3  ;;  %vm23_vm0 = vcmp.lt.s32.totalorder %v20_v6, 0  ;;  %v24_v9 = vsub.s32 0, %v20_v6 }
   0x9   :  { %vm29_vm1 = vcmp.lt.s32.totalorder %v22_v7, 0  ;;  %v30_v10 = vsub.s32 0, %v22_v7  ;;  %vm26_vm2 = vcmp.lt.s32.totalorder %v21_v8, 0  ;;  %v27_v11 = vsub.s32 0, %v21_v8 }
   0xa   :  { %v25_v12 = vsel %vm23_vm0, %v24_v9, %v20_v6  ;;  %88 = vperm.xlu0 %143, %v13_v28   ;;  %vm59_vm0 = vcmask 171008  }
   0xb   :  { %v31_v13 = vsel %vm29_vm1, %v30_v10, %v22_v7  ;;  %v28_v14 = vsel %vm26_vm2, %v27_v11, %v21_v8  ;;  %vm32_vm4 = vcmp.eq.s32.totalorder %v25_v12, 0  ;;  %vm35_vm8 = vcmp.eq.s32.totalorder %v25_v12, 1 }
   0xc   :  { %vm37_vm5 = vcmp.eq.s32.totalorder %v31_v13, 1  ;;  %vm40_vm6 = vcmp.eq.s32.totalorder %v31_v13, 2  ;;  %vm43_vm7 = vcmp.eq.s32.totalorder %v31_v13, 3  ;;  %vm34_vm9 = vcmp.eq.s32.totalorder %v31_v13, 0 }
   0xd   :  { %v46_v16 = vsel %vm43_vm7, 0.75, %v171_v15  ;;  %vm36_vm10 = vcmp.eq.s32.totalorder %v28_v14, 1  ;;  %vm39_vm11 = vcmp.eq.s32.totalorder %v28_v14, 2  ;;  %vm42_vm12 = vcmp.eq.s32.totalorder %v28_v14, 3 }
   0xe   :  { %v49_v17 = vsel %vm40_vm6, 0.8333333, %v46_v16  ;;  %vm38_vm13 = vcmp.eq.s32.totalorder %v25_v12, 2  ;;  %vm41_vm14 = vcmp.eq.s32.totalorder %v25_v12, 3  ;;  %vm33_vm15 = vcmp.eq.s32.totalorder %v28_v14, 0 }
   0xf   :  { %v52_v18 = vsel %vm37_vm5, 0.9166667, %v49_v17  ;;  %v45_v19 = vsel %vm42_vm12, 0.75, %v171_v15  ;;  %v44_v20 = vsel %vm41_vm14, 0.75, %v171_v15  ;;  %vm105_vm1 = vcmask 343208  }
  0x10   :  { %v55_v21 = vsel %vm34_vm9, 1.0, %v52_v18  ;;  %v48_v22 = vsel %vm39_vm11, 0.8333333, %v45_v19  ;;  %v47_v23 = vsel %vm38_vm13, 0.8333333, %v44_v20  ;;  %vm112_vm2 = vcmask 515408  }
  0x11   :  { %135 = vmatpush.msk.msra.mxu0 %vm62_vm3, %v55_v21  ;;  %v51_v24 = vsel %vm36_vm10, 0.9166667, %v48_v22  ;;  %v50_v25 = vsel %vm35_vm8, 0.9166667, %v47_v23  ;;  %vm117_vm3 = vcmask 687608  }
  0x12   :  { %v54_v26 = vsel %vm33_vm15, 1.0, %v51_v24  ;;  %v53_v27 = vsel %vm32_vm4, 1.0, %v50_v25 }
  0x13   :  { %80 = vmatpush.msra.mxu0 %v54_v26 }
  0x15   :  { %81 = vmatpush.msra.mxu0 %v53_v27 }
  0x74   :  { %v58_v31 = vpop.permute.xlu0 %57 }
  0x75   :  { %136 = vmatmul.msk.f32.vlgmr.msra.gmra.mxu0 %vm59_vm0, %v58_v31 }
  0x78   :  { %v98_v32 = vpop.permute.xlu1 %97 }
  0x79   :  { %v107_v33 = vsub.f32 %v93_v29, %v98_v32 }
  0x7b   :  { %109 = vrot.lane.b32.xlu2 %v107_v33, %s174_s14 }
  0x7c   :  { %v89_v34 = vpop.permute.xlu0 %88 }
  0x83   :  { %114 = vrot.lane.b32.xlu2 %v93_v29, %s174_s14 }
  0xd5   :  { %v110_v40 = vpop.permute.xlu2 %109 }
  0xdd   :  { %v115_v42 = vpop.permute.xlu2 %114 }
  0xf2   :  { %v83_v35 = vpop.f32.mrf.mxu0 }
  0xf3   :  { %v91_v36 = vmul.f32 %v89_v34, %v83_v35 }
  0xf5   :  { %v92_v37 = vmul.f32 %v91_v36, %v194_v0 }
  0xf7   :  { %v94_v38 = vsub.f32 0.0, %v92_v37  ;;  %v100_v39 = vsub.f32 %v92_v37, %v98_v32 }
  0xf9   :  { %95 = vst.msk [vmem:[#allocation2] sm:$0xff] %vm59_vm0, %v94_v38  ;;  %102 = vrot.lane.b32.xlu1 %v100_v39, %s174_s14 }
 0x16b   :  { %v103_v41 = vpop.permute.xlu1 %102 }
 0x16c   :  { %106 = vst.msk [vmem:[#allocation2] sm:$0xff] %vm105_vm1, %v103_v41 }
 0x16d   :  { %113 = vst.msk [vmem:[#allocation2] sm:$0xff] %vm112_vm2, %v110_v40 }
 0x16e   :  { %118 = vst.msk [vmem:[#allocation2] sm:$0xff] %vm117_vm3, %v115_v42 }
 0x16f   :  { %129 = dma.vmem_to_hbm [thread:$0]  %s125_s15, 128, %s127_s18, [#allocation3]  }
 0x170   :  { %168 = dma.done.wait [#allocation3], 128  }
 0x171   :  { %169 = vsyncadd [#allocation3], 4294967168 }
 0x172   :  { %134 = vsyncpa [#allocation3], 1 }

</bundles_post_ra>
